<compile_context>
chip_gen: v7x
topology: tpu7x:2x2x1
jax: 0.10.0
libtpu: 0.0.40
codegen_flags: <defaults>
</compile_context>

<pallas_src>
import jax
import jax.numpy as jnp
from jax import lax
from jax.experimental import pallas as pl
from jax.experimental.pallas import tpu as pltpu


# Contract the trailing (feature) axis of both operands: W1 @ x.T without
# materializing x.T (identical dimension numbers to the q @ k.T matmul in the
# official Pallas TPU flash-attention kernel).
_NT_DIM_NUMBERS = (((1,), (1,)), ((), ()))


def mlp_kernel(x_ref, w1_ref, b1_ref, w2_ref, b2_ref, o_ref):
    # x_ref : (TILE_B, 4) f32  -- native row-major batch block (streamed)
    # w1_ref: (H, 4)      bf16 -- resident across grid steps
    # b1_ref: (H, 1)      f32
    # w2_ref: (2, H)      bf16 -- resident across grid steps
    # b2_ref: (2, 1)      f32
    # o_ref : (2, TILE_B) f32  -- lane-dense output slab (batch on lanes)
    xb = x_ref[...].astype(jnp.bfloat16)                      # in-kernel cast (free)
    # h.T = W1 @ x.T  -> (H, TILE_B): batch stays on the lane axis throughout.
    h = lax.dot_general(w1_ref[...], xb, _NT_DIM_NUMBERS,
                        preferred_element_type=jnp.float32)
    h = jnp.maximum(h + b1_ref[...], 0.0)                     # bias + ReLU
    y = jnp.dot(w2_ref[...], h.astype(jnp.bfloat16),
                preferred_element_type=jnp.float32)           # (2, TILE_B)
    o_ref[...] = y + b2_ref[...]


def network_forward(x, w1, b1, w2, b2, *, tile_b=16384, transpose_output=True):
    """Forward pass of y = Linear(H,2)(ReLU(Linear(4,H)(x))).

    x : (B, 4) float32
    w1: (H, 4), b1: (H,)    -- PyTorch nn.Linear layout [out_features, in_features]
    w2: (2, H), b2: (2,)
    Returns (B, 2) float32, or the raw lane-dense (2, B_pad) slab if
    transpose_output=False (fuse the transpose into the consumer instead).
    """
    B, in_features = x.shape
    H = w1.shape[0]
    out_features = w2.shape[0]

    # Lane-dense batch tiling: big blocks so per-grid-step overhead is
    # negligible, clamped so tiny batches aren't over-padded.  Always a
    # multiple of 128 (lane width).
    tile_b = min(tile_b, pl.cdiv(B, 128) * 128)
    tile_b = max(tile_b, 128)
    b_pad = pl.cdiv(B, tile_b) * tile_b
    num_tiles = b_pad // tile_b

    # x is streamed directly in its native layout; the pad is a no-op whenever
    # B is already a multiple of tile_b.
    x_in = jnp.pad(x, ((0, b_pad - B), (0, 0)))

    # Weights/biases: tiny, cast once, VMEM-resident across all grid steps.
    w1b = w1.astype(jnp.bfloat16)                              # (H, 4)
    w2b = w2.astype(jnp.bfloat16)                              # (2, H)
    b1c = b1.reshape(H, 1).astype(jnp.float32)
    b2c = b2.reshape(out_features, 1).astype(jnp.float32)

    cost = pl.CostEstimate(
        flops=2 * b_pad * (in_features * H + H * out_features),
        transcendentals=0,
        bytes_accessed=(x_in.size * 4                          # f32 input stream
                        + b_pad * out_features * 4             # f32 output stream
                        + (w1b.size + w2b.size) * 2            # bf16 weights (once)
                        + (b1c.size + b2c.size) * 4),          # f32 biases (once)
    )

    yt = pl.pallas_call(
        mlp_kernel,
        out_shape=jax.ShapeDtypeStruct((out_features, b_pad), jnp.float32),
        grid=(num_tiles,),
        in_specs=[
            pl.BlockSpec((tile_b, in_features), lambda i: (i, 0)),  # x stream (native)
            pl.BlockSpec((H, in_features), lambda i: (0, 0)),       # W1 resident
            pl.BlockSpec((H, 1), lambda i: (0, 0)),                 # b1 resident
            pl.BlockSpec((out_features, H), lambda i: (0, 0)),      # W2 resident
            pl.BlockSpec((out_features, 1), lambda i: (0, 0)),      # b2 resident
        ],
        out_specs=pl.BlockSpec((out_features, tile_b), lambda i: (0, i)),
        compiler_params=pltpu.CompilerParams(
            # Shards batch tiles across TensorCores on v7x; no-op on v5e/v6e.
            # If a v7x profile shows one idle TC, switch to pltpu.CORE_PARALLEL.
            dimension_semantics=("parallel",),
        ),
        cost_estimate=cost,
    )(x_in, w1b, b1c, w2b, b2c)

    if not transpose_output:
        return yt                                              # (2, b_pad) lane-dense slab
    # Padded batch columns hold garbage (relu(b1)·W2+b2); slice them off here.
    return yt[:, :B].T                                         # (B, 2)


def init_params(key, in_features=4, hidden=32, out_features=2):
    # PyTorch nn.Linear default init: U(-1/sqrt(fan_in), 1/sqrt(fan_in)),
    # weights stored [out_features, in_features].
    k1, k2, k3, k4 = jax.random.split(key, 4)
    bound1 = 1.0 / float(in_features) ** 0.5
    bound2 = 1.0 / float(hidden) ** 0.5
    w1 = jax.random.uniform(k1, (hidden, in_features), jnp.float32, -bound1, bound1)
    b1 = jax.random.uniform(k2, (hidden,), jnp.float32, -bound1, bound1)
    w2 = jax.random.uniform(k3, (out_features, hidden), jnp.float32, -bound2, bound2)
    b2 = jax.random.uniform(k4, (out_features,), jnp.float32, -bound2, bound2)
    return w1, b1, w2, b2


def reference_forward(x, w1, b1, w2, b2):
    # Pure-JAX reference mirroring the kernel's bf16-input / f32-accumulate math.
    # TODO(synk): for strict f32 parity with the PyTorch Network, use an f32 /
    # bf16x3 matmul path instead of the single-pass bf16 cast.
    xb = x.astype(jnp.bfloat16)
    h = jnp.dot(xb, w1.astype(jnp.bfloat16).T,
                preferred_element_type=jnp.float32) + b1[None, :]
    h = jnp.maximum(h, 0.0)
    y = jnp.dot(h.astype(jnp.bfloat16), w2.astype(jnp.bfloat16).T,
                preferred_element_type=jnp.float32) + b2[None, :]
    return y


if __name__ == "__main__":
    key = jax.random.PRNGKey(0)
    k_x, k_p = jax.random.split(key)

    batch, in_features, hidden, out_features = 8, 4, 32, 2
    x = jax.random.normal(k_x, (batch, in_features), jnp.float32)
    w1, b1, w2, b2 = init_params(k_p, in_features, hidden, out_features)

    # Single-tile path (batch padded up to one 128-lane tile).
    y = jax.block_until_ready(network_forward(x, w1, b1, w2, b2))
    y_ref = reference_forward(x, w1, b1, w2, b2)
    assert y.shape == (batch, out_features)
    assert jnp.allclose(y, y_ref, atol=1e-4, rtol=1e-4)

    # Multi-tile path: several grid steps + padding (300 rows, 128-row tiles).
    x2 = jax.random.normal(jax.random.PRNGKey(1), (300, in_features), jnp.float32)
    y2 = jax.block_until_ready(network_forward(x2, w1, b1, w2, b2, tile_b=128))
    y2_ref = reference_forward(x2, w1, b1, w2, b2)
    assert y2.shape == (300, out_features)
    assert jnp.allclose(y2, y2_ref, atol=1e-4, rtol=1e-4)

    # Default-tile clamp path (B=1000 -> tile_b clamps to 1024, single tile).
    x3 = jax.random.normal(jax.random.PRNGKey(2), (1000, in_features), jnp.float32)
    y3 = jax.block_until_ready(network_forward(x3, w1, b1, w2, b2))
    y3_ref = reference_forward(x3, w1, b1, w2, b2)
    assert y3.shape == (1000, out_features)
    assert jnp.allclose(y3, y3_ref, atol=1e-4, rtol=1e-4)

    print("KERNEL_OK")
</pallas_src>

<mosaic_0001>
module attributes {stable_mosaic.version = 11 : i64} {
  func.func @mlp_kernel(%arg0: i32, %arg1: memref<128x4xf32, #tpu.memory_space<vmem>>, %arg2: memref<32x4xbf16, #tpu.memory_space<vmem>>, %arg3: memref<32x1xf32, #tpu.memory_space<vmem>>, %arg4: memref<2x32xbf16, #tpu.memory_space<vmem>>, %arg5: memref<2x1xf32, #tpu.memory_space<vmem>>, %arg6: memref<2x128xf32, #tpu.memory_space<vmem>>) attributes {dimension_semantics = [#tpu.dimension_semantics<parallel>], iteration_bounds = array<i64: 1>, scalar_prefetch = 0 : i64, scratch_operands = 0 : i64, tpu.core_type = #tpu.core_type<tc>, window_params = [{transform_indices = @transform_0, window_bounds = array<i64: 128, 4>}, {pipeline_mode = #tpu.pipeline_mode<synchronous>, transform_indices = @transform_1, window_bounds = array<i64: 32, 4>}, {pipeline_mode = #tpu.pipeline_mode<synchronous>, transform_indices = @transform_2, window_bounds = array<i64: 32, 1>}, {pipeline_mode = #tpu.pipeline_mode<synchronous>, transform_indices = @transform_3, window_bounds = array<i64: 2, 32>}, {pipeline_mode = #tpu.pipeline_mode<synchronous>, transform_indices = @transform_4, window_bounds = array<i64: 2, 1>}, {transform_indices = @transform_5, window_bounds = array<i64: 2, 128>}]} {
    %c0 = arith.constant 0 : index
    %c0_0 = arith.constant 0 : index
    %0 = vector.load %arg1[%c0, %c0_0] : memref<128x4xf32, #tpu.memory_space<vmem>>, vector<128x4xf32>
    %1 = arith.truncf %0 : vector<128x4xf32> to vector<128x4xbf16>
    %c0_1 = arith.constant 0 : index
    %c0_2 = arith.constant 0 : index
    %2 = vector.load %arg2[%c0_1, %c0_2] : memref<32x4xbf16, #tpu.memory_space<vmem>>, vector<32x4xbf16>
    %cst = arith.constant dense<0.000000e+00> : vector<32x128xf32>
    %3 = tpu.matmul %2, %1, %cst {dimension_numbers = #tpu.dot_dimension_numbers<[1], [1], [0], [0], [0, 0, 1, 0], [], []>} : vector<32x4xbf16>, vector<128x4xbf16>, vector<32x128xf32> -> vector<32x128xf32>
    %c0_3 = arith.constant 0 : index
    %c0_4 = arith.constant 0 : index
    %4 = vector.load %arg3[%c0_3, %c0_4] : memref<32x1xf32, #tpu.memory_space<vmem>>, vector<32x1xf32>
    %5 = vector.broadcast %4 : vector<32x1xf32> to vector<32x128xf32>
    %6 = arith.addf %3, %5 : vector<32x128xf32>
    %cst_5 = arith.constant 0.000000e+00 : f32
    %7 = vector.broadcast %cst_5 : f32 to vector<32x128xf32>
    %8 = arith.maximumf %6, %7 : vector<32x128xf32>
    %c0_6 = arith.constant 0 : index
    %c0_7 = arith.constant 0 : index
    %9 = vector.load %arg4[%c0_6, %c0_7] : memref<2x32xbf16, #tpu.memory_space<vmem>>, vector<2x32xbf16>
    %10 = arith.truncf %8 : vector<32x128xf32> to vector<32x128xbf16>
    %cst_8 = arith.constant dense<0.000000e+00> : vector<2x128xf32>
    %11 = tpu.matmul %9, %10, %cst_8 {dimension_numbers = #tpu.dot_dimension_numbers<[1], [0], [0], [1], [0, 0, 1, 1], [], []>} : vector<2x32xbf16>, vector<32x128xbf16>, vector<2x128xf32> -> vector<2x128xf32>
    %c0_9 = arith.constant 0 : index
    %c0_10 = arith.constant 0 : index
    %12 = vector.load %arg5[%c0_9, %c0_10] : memref<2x1xf32, #tpu.memory_space<vmem>>, vector<2x1xf32>
    %13 = vector.broadcast %12 : vector<2x1xf32> to vector<2x128xf32>
    %14 = arith.addf %11, %13 : vector<2x128xf32>
    %c0_11 = arith.constant 0 : index
    %c0_12 = arith.constant 0 : index
    %15 = vector.load %arg6[%c0_11, %c0_12] : memref<2x128xf32, #tpu.memory_space<vmem>>, vector<2x128xf32>
    tpu.vector_store %arg6[%c0_11, %c0_12], %14 {strides = array<i32>} : memref<2x128xf32, #tpu.memory_space<vmem>>, vector<2x128xf32>,
    return
  }
  func.func @transform_0(%arg0: i32) -> (i32, i32) {
    %c0_i32 = arith.constant 0 : i32
    %c0_i32_0 = arith.constant 0 : i32
    return %arg0, %c0_i32 : i32, i32
  }
  func.func @transform_1(%arg0: i32) -> (i32, i32) {
    %c0_i32 = arith.constant 0 : i32
    %c0_i32_0 = arith.constant 0 : i32
    %c0_i32_1 = arith.constant 0 : i32
    return %c0_i32, %c0_i32_0 : i32, i32
  }
  func.func @transform_2(%arg0: i32) -> (i32, i32) {
    %c0_i32 = arith.constant 0 : i32
    %c0_i32_0 = arith.constant 0 : i32
    %c0_i32_1 = arith.constant 0 : i32
    return %c0_i32, %c0_i32_0 : i32, i32
  }
  func.func @transform_3(%arg0: i32) -> (i32, i32) {
    %c0_i32 = arith.constant 0 : i32
    %c0_i32_0 = arith.constant 0 : i32
    %c0_i32_1 = arith.constant 0 : i32
    return %c0_i32, %c0_i32_0 : i32, i32
  }
  func.func @transform_4(%arg0: i32) -> (i32, i32) {
    %c0_i32 = arith.constant 0 : i32
    %c0_i32_0 = arith.constant 0 : i32
    %c0_i32_1 = arith.constant 0 : i32
    return %c0_i32, %c0_i32_0 : i32, i32
  }
  func.func @transform_5(%arg0: i32) -> (i32, i32) {
    %c0_i32 = arith.constant 0 : i32
    %c0_i32_0 = arith.constant 0 : i32
    return %c0_i32, %arg0 : i32, i32
  }
}

</mosaic_0001>

<bundles_post_ra>
// kernel: tpu_custom_call.1
= control target key start
LH: loop header
LB: loop body
LE: loop exit
PB: predicated region body
PF: predicated region fallthrough
CT: control target
= control target key end

     0   :  { %vm84_vm0 = vcmask 31744   ;;  %v322_v5 = vmov 0   ;;  %s458_s0 = inlined_call_operand.vmem [shape: f32[128,4], index: 0, kind: input, shape index: {}]   ;;  %s459_s1 = inlined_call_operand.vmem [shape: bf16[32,4], index: 1, kind: input, shape index: {}]   ;;  %s460_s2 = inlined_call_operand.vmem [shape: f32[32,1], index: 2, kind: input, shape index: {}]   ;;  %s461_s3 = inlined_call_operand.vmem [shape: bf16[2,32], index: 3, kind: input, shape index: {}]   ;;  %s462_s4 = inlined_call_operand.vmem [shape: f32[2,1], index: 4, kind: input, shape index: {}]   ;;  %s463_s5 = inlined_call_operand.hbm [shape: f32[2,128], index: 5, kind: output, shape index: {}]  }
   0x1   :  { %v22_v0 = vld [vmem:[%s458_s0] sm:$0xff]  ;;  %v23_v1 = vld [vmem:[%s458_s0 + $0x8] sm:$0xff]  ;;  %v24_v2 = vld [vmem:[%s458_s0 + $0x10] sm:$0xff]  ;;  %294 = vset.pattern.permute.xlu0 %v322_v5  ;;  %295 = vset.pattern.permute.xlu1 %v322_v5 }
   0x2   :  { %v38_v3 = vpack.c.bf16 %v23_v1, %v22_v0  ;;  %v25_v4 = vld [vmem:[%s458_s0 + $0x18] sm:$0xff]  ;;  %v26_v8 = vld [vmem:[%s458_s0 + $0x20] sm:$0xff]  ;;  %v27_v9 = vld [vmem:[%s458_s0 + $0x28] sm:$0xff] }
   0x3   :  { %v39_v6 = vpack.c.bf16 %v25_v4, %v24_v2  ;;  %v296_v10 = vld [vmem:[%s459_s1] sm:$0xff]   ;;  %v52_v12 = vld [vmem:[%s460_s2 + $0x10] sm:$0xff]  ;;  %v40_v14 = vpack.c.bf16 %v27_v9, %v26_v8  ;;  %v51_v15 = vld [vmem:[%s460_s2 + $0x8] sm:$0xff] }
   0x4   :  { %282 = vmatprep.subr.msk.bf16.mxu0 %vm84_vm0, %v38_v3  ;;  %v92_v7 = vsel %vm84_vm0, %v38_v3, 0  ;;  %v50_v11 = vld [vmem:[%s460_s2] sm:$0xff]  ;;  %270 = vmatprep.mubr.msk.bf16.mxu0 %vm84_vm0, %v296_v10 }
   0x5   :  { %255 = vmatpush3.bf16.xpose.msra.mxu0 %v92_v7  ;;  %56 = vperm.xlu0 %294, %v50_v11   ;;  %v95_v13 = vsel %vm84_vm0, %v39_v6, 0 }
   0x6   :  { %283 = vmatprep.subr.msk.bf16.mxu0 %vm84_vm0, %v39_v6  ;;  %66 = vperm.xlu1 %295, %v52_v12  }
   0x7   :  { %10 = vsyncpa [#allocation3], 0  ;;  %v53_v16 = vld [vmem:[%s460_s2 + $0x18] sm:$0xff]  ;;  %v171_v17 = vld [vmem:[%s462_s4] sm:$0x3]  ;;  %v98_v20 = vsel %vm84_vm0, %v40_v14, 0 }
   0x8   :  { %v28_v18 = vld [vmem:[%s458_s0 + $0x30] sm:$0xff]  ;;  %v29_v19 = vld [vmem:[%s458_s0 + $0x38] sm:$0xff]  ;;  %v30_v22 = vld [vmem:[%s458_s0 + $0x40] sm:$0xff]  ;;  %v323_v40 = vmov 0.0   ;;  %vm324_vm1 = vmmov 0   ;;  %vm177_vm2 = vcmask 261120  }
   0x9   :  { %61 = vperm.xlu0 %294, %v51_v15   ;;  %v41_v21 = vpack.c.bf16 %v29_v19, %v28_v18  ;;  %v31_v23 = vld [vmem:[%s458_s0 + $0x48] sm:$0xff]  ;;  %v32_v26 = vld [vmem:[%s458_s0 + $0x50] sm:$0xff]  ;;  %v33_v27 = vld [vmem:[%s458_s0 + $0x58] sm:$0xff]  ;;  %274 = vmatprep.subr.bf16.mxu1 %v323_v40  ;;  %s325_s12 = smov [#allocation2]  }
   0xa   :  { %71 = vperm.xlu1 %295, %v53_v16   ;;  %v42_v25 = vpack.c.bf16 %v31_v23, %v30_v22  ;;  %v43_v29 = vpack.c.bf16 %v33_v27, %v32_v26  ;;  %v34_v30 = vld [vmem:[%s458_s0 + $0x60] sm:$0xff]  ;;  %v35_v31 = vld [vmem:[%s458_s0 + $0x68] sm:$0xff]  ;;  %v36_v34 = vld [vmem:[%s458_s0 + $0x70] sm:$0xff]  ;;  %278 = vmatprep.mubr.msk.bf16.mxu1 %vm324_vm1, %v323_v40  ;;  %s228_s13 = sshll.u32 %s325_s12, 4  ;;  %s229_s13 = int_to_ptr.vmem [resolvable:$true] %s228_s13 }
   0xb   :  { %v101_v24 = vsel %vm84_vm0, %v41_v21, 0  ;;  %v44_v33 = vpack.c.bf16 %v35_v31, %v34_v30  ;;  %v37_v35 = vld [vmem:[%s458_s0 + $0x78] sm:$0xff]  ;;  %v297_v39 = vld [vmem:[%s459_s1 + $0x8] sm:$0xff]   ;;  %v168_v59 = vld [vmem:[%s461_s3] sm:$0x1]  ;;  %s298_s14 = scalar_lea.vmem %s229_s13, 32  ;;  %p303_p1 = scmp.lt.s32.totalorder %s229_s13, %s229_s13 }
   0xc   :  { %v104_v28 = vsel %vm84_vm0, %v42_v25, 0  ;;  %v107_v32 = vsel %vm84_vm0, %v43_v29, 0  ;;  %v45_v37 = vpack.c.bf16 %v37_v35, %v36_v34  ;;  %p299_p0 = scmp.ne.s32.totalorder %s229_s13, %s298_s14  ;;  %p304_p2 = scmp.lt.s32.totalorder %s298_s14, %s298_s14 }
   0xd   :  { %257 = vmatpush3.bf16.xpose.msra.mxu0 %v95_v13  ;;  %174 = vperm.xlu0 %294, %v171_v17   ;;  %v110_v36 = vsel %vm84_vm0, %v44_v33, 0 }
   0xe   :  { %284 = vmatprep.subr.msk.bf16.mxu0 %vm84_vm0, %v40_v14  ;;  %v113_v38 = vsel %vm84_vm0, %v45_v37, 0  ;;  %p305_p3 = por %p304_p2, %p303_p1 }
  0x10   :  { %p306_p4 = pnand %p305_p3, %p299_p0 }
  0x15   :  { %259 = vmatpush3.bf16.xpose.msra.mxu0 %v98_v20 }
  0x16   :  { %285 = vmatprep.subr.msk.bf16.mxu0 %vm84_vm0, %v41_v21 }
  0x1d   :  { %261 = vmatpush3.bf16.xpose.msra.mxu0 %v101_v24 }
  0x1e   :  { %286 = vmatprep.subr.msk.bf16.mxu0 %vm84_vm0, %v42_v25 }
  0x25   :  { %263 = vmatpush3.bf16.xpose.msra.mxu0 %v104_v28 }
  0x26   :  { %287 = vmatprep.subr.msk.bf16.mxu0 %vm84_vm0, %v43_v29 }
  0x2d   :  { %265 = vmatpush3.bf16.xpose.msra.mxu0 %v107_v32 }
  0x2e   :  { %288 = vmatprep.subr.msk.bf16.mxu0 %vm84_vm0, %v44_v33 }
  0x35   :  { %267 = vmatpush3.bf16.xpose.msra.mxu0 %v110_v36 }
  0x36   :  { %289 = vmatprep.subr.msk.bf16.mxu0 %vm84_vm0, %v45_v37 }
  0x3d   :  { %269 = vmatpush3.bf16.xpose.msra.mxu0 %v113_v38 }
  0x44   :  { %271 = vmatmul.mubr.msk.bf16.vlgmr.msra.gmra.mrb[0].mxu0 %vm84_vm0, %v297_v39 }
  0x84   :  { %v57_v42 = vpop.permute.xlu0 %56 }
  0x85   :  { %v67_v41 = vpop.permute.xlu1 %66 }
  0x88   :  { %v62_v49 = vpop.permute.xlu0 %61 }
  0x89   :  { %v72_v44 = vpop.permute.xlu1 %71 }
  0x8c   :  { %v175_v60 = vpop.permute.xlu0 %174 }
 0x117   :  { %v272_v43 = vpop.f32.mrb[0].mxu0 }
 0x118   :  { %v158_v45 = vadd.f32 %v272_v43, %v67_v41  ;;  %v149_v46 = vpop.f32.mrb[1].mxu0 }
 0x119   :  { %v150_v47 = vadd.f32 %v149_v46, %v57_v42  ;;  %v273_v48 = vpop.f32.mrb[2].mxu0 }
 0x11a   :  { %v161_v50 = vadd.f32 %v273_v48, %v72_v44  ;;  %v152_v51 = vpop.f32.mrb[3].mxu0  ;;  %v166_v53 = vmax.f32 %v158_v45, 0.0 }
 0x11b   :  { %v153_v52 = vadd.f32 %v152_v51, %v62_v49  ;;  %v164_v55 = vmax.f32 %v150_v47, 0.0 }
 0x11c   :  { %v167_v54 = vmax.f32 %v161_v50, 0.0 }
 0x11d   :  { %v165_v56 = vmax.f32 %v153_v52, 0.0 }
 0x11e   :  { %v170_v57 = vpack.c.bf16 %v167_v54, %v166_v53 }
 0x11f   :  { %v169_v58 = vpack.c.bf16 %v165_v56, %v164_v55 }
 0x121   :  { %275 = vmatpush3.bf16.msra.mxu1 %v169_v58 }
 0x122   :  { %276 = vmatprep.subr.bf16.mxu1 %v323_v40 }
 0x125   :  { %277 = vmatpush3.bf16.msra.mxu1 %v170_v57 }
 0x128   :  { %279 = vmatmul.mubr.msk.bf16.vlgmr.msra.gmra.mrb[0].mxu1 %vm177_vm2, %v168_v59 }
 0x1fb   :  { %v215_v61 = vpop.f32.mrb[0].mxu1 }
 0x1fc   :  { %v216_v62 = vadd.f32 %v215_v61, %v175_v60  ;;  %v280_v63 = vpop.f32.mrb[1].mxu1 }
 0x1fd   :  { %v218_v0 = vpop.f32.mrb[2].mxu1 }
 0x1fe   :  { %221 = vst [vmem:[#allocation2] sm:$0x3] %v216_v62  ;;  %v281_v1 = vpop.f32.mrb[3].mxu1 }
 0x1ff   :  { %309 = shalt.err (!%p306_p4)
}
 0x200   :  { %s310_s16 = scalar_lea.hbm %s463_s5, 32 }
 0x201   :  { %p311_p5 = scmp.ne.s32.totalorder %s463_s5, %s310_s16  ;;  %p314_p6 = scmp.lt.u32.totalorder %s310_s16, %s463_s5 }
 0x203   :  { %p316_p7 = pnand %p314_p6, %p311_p5 }
 0x205   :  { %319 = shalt.err (!%p316_p7)
}
 0x206   :  { %231 = dma.vmem_to_hbm [thread:$0]  %s229_s13, 32, %s463_s5, [#allocation3]  }
 0x207   :  { %320 = dma.done.wait [#allocation3], 32  }
 0x208   :  { %321 = vsyncadd [#allocation3], 4294967264 }
 0x209   :  { %235 = vsyncpa [#allocation3], 1 }

</bundles_post_ra>
